<compile_context>
chip_gen: v7x
topology: tpu7x:2x2x1
jax: 0.10.0
libtpu: 0.0.40
codegen_flags: <defaults>
</compile_context>

<pallas_src>
import functools

import jax
import jax.numpy as jnp
from jax.experimental import pallas as pl
from jax.experimental.pallas import tpu as pltpu


def _round_up(n, m):
    return ((n + m - 1) // m) * m


def _cdiv(a, b):
    return -(-a // b)


def _vmem_budget_bytes():
    """~3/4 of per-core VMEM (64 MiB on v7x, 128 MiB on v5e/v6e)."""
    try:
        return int(pltpu.get_tpu_info().vmem_capacity_bytes) * 3 // 4
    except Exception:
        return 96 * 1024 * 1024


def _resident_spec(shape, index_map):
    """BlockSpec for a grid-invariant operand.

    Single-buffered (pl.Buffered(1)) when the running JAX supports it, so the
    resident weight occupies one VMEM copy instead of two.  Falls back to the
    default (double-buffered) spec; the caller sizes VMEM accordingly via the
    returned buffer count.
    """
    try:
        return pl.BlockSpec(shape, index_map, pipeline_mode=pl.Buffered(1)), 1
    except Exception:
        return pl.BlockSpec(shape, index_map), 2


def ctc_logsoftmax_kernel(x_ref, w_ref, b_ref, o_ref):
    # Cast activations to bf16 in-kernel (VPU cast rides under the MXU); this
    # avoids a separate XLA cast/pad pass over x in HBM.
    x = x_ref[...].astype(jnp.bfloat16)
    # (tm, H) bf16 @ (H, V) bf16 on the MXU with f32 accumulation.
    logits = jnp.dot(x, w_ref[...], preferred_element_type=jnp.float32)
    logits = logits + b_ref[...]  # (1, V) f32 bias row
    # Numerically-stable log_softmax over the vocab (lane) axis.  XLU row
    # reductions and EUP exp/log ride in otherwise-idle VLIW slots.
    m = jnp.max(logits, axis=-1, keepdims=True)
    shifted = logits - m
    lse = jnp.log(jnp.sum(jnp.exp(shifted), axis=-1, keepdims=True))
    o_ref[...] = (shifted - lse).astype(o_ref.dtype)
    # TODO(synk): skewed pipeline (matmul tile i into a 2-slot logits scratch,
    # softmax+store tile i-1) would hide the epilogue behind the next tile's
    # MXU work on compute-bound v5e; omitted to keep the grid 'parallel'.


@functools.partial(jax.jit, static_argnames=("tm", "out_dtype"))
def ctc_forward(x, w, b, *, tm=256, out_dtype=jnp.float32):
    """x: (B, T, H) f32, w: (H, V), b: (V,) -> (B, T, V) log-probs."""
    B, T, H = x.shape
    Hw, V = w.shape
    assert Hw == H
    M = B * T

    out_bytes = jnp.dtype(out_dtype).itemsize
    # Lane-padded sizes used only for VMEM-footprint accounting; the kernel
    # itself uses exact shapes (Mosaic masks padding lanes internally).
    Vp = _round_up(V, 128)
    Hp = _round_up(H, 128)

    # --- Row-tile selection -------------------------------------------------
    tm_eff = min(int(tm), _round_up(M, 8))
    tm_eff = max(8, _round_up(tm_eff, 8))
    # v7x has 2 TensorCores: give the 'parallel' grid at least 2 steps for
    # moderate batches so both cores get work.
    if M >= 512 and _cdiv(M, tm_eff) < 2:
        tm_eff = max(256, _round_up(_cdiv(M, 2), 8))

    # Resident operands (grid-invariant index maps): weight + bias.
    w_spec, w_bufs = _resident_spec((H, V), lambda i: (0, 0))
    b_spec, _ = _resident_spec((1, V), lambda i: (0, 0))

    budget = _vmem_budget_bytes()

    def vmem_estimate(t):
        return (w_bufs * H * Vp * 2            # resident bf16 weight (1 or 2 copies)
                + w_bufs * Vp * 4              # f32 bias row
                + 2 * t * Hp * 4               # double-buffered f32 input tile
                + 2 * t * Vp * out_bytes       # double-buffered output tile
                + 3 * t * Vp * 4               # f32 logits / softmax temporaries
                + (2 << 20))                   # slack

    # Shrink the row tile only if VMEM is genuinely tight.  Never drop below
    # 256 (MXU is 256x256 on v6e/v7x) unless the budget truly forces it.
    floor = min(256, tm_eff)
    while tm_eff > floor and vmem_estimate(tm_eff) > budget:
        tm_eff = max(floor, _round_up(tm_eff // 2, 8))
    while tm_eff > 64 and vmem_estimate(tm_eff) > budget:
        tm_eff = max(64, _round_up(tm_eff // 2, 8))
    # TODO(synk): if the resident bf16 weight alone exceeds the per-core VMEM
    # budget (very large odim on v7x's 64 MiB), switch to a vocab-tiled
    # two-pass online-logsumexp kernel instead of keeping the weight resident.

    # --- Operands (no padding, no extra passes over x) ----------------------
    x2 = x.reshape(M, H)                       # free collapse, stays f32
    w2 = w.astype(jnp.bfloat16)                # one-time small cast
    b2 = b.astype(jnp.float32).reshape(1, V)

    grid = (_cdiv(M, tm_eff),)

    compiler_kwargs = dict(dimension_semantics=("parallel",))
    est = vmem_estimate(tm_eff)
    if est > 28 * 1024 * 1024:
        cap = _vmem_budget_bytes() * 4 // 3    # ~full per-core VMEM
        compiler_kwargs["vmem_limit_bytes"] = int(
            min(cap, max(est + (8 << 20), 48 << 20)))

    cost = pl.CostEstimate(
        flops=2 * M * H * V,
        transcendentals=M * V,
        bytes_accessed=M * H * 4 + H * V * 2 + V * 4 + M * V * out_bytes,
    )

    out2 = pl.pallas_call(
        ctc_logsoftmax_kernel,
        out_shape=jax.ShapeDtypeStruct((M, V), out_dtype),
        grid_spec=pltpu.PrefetchScalarGridSpec(
            num_scalar_prefetch=0,
            grid=grid,
            in_specs=[
                pl.BlockSpec((tm_eff, H), lambda i: (i, 0)),   # f32 activation row tile
                w_spec,                                        # resident (H, V) bf16 weight
                b_spec,                                        # resident (1, V) f32 bias
            ],
            out_specs=pl.BlockSpec((tm_eff, V), lambda i: (i, 0)),
        ),
        compiler_params=pltpu.CompilerParams(**compiler_kwargs),
        cost_estimate=cost,
    )(x2, w2, b2)

    # No slicing: output already has the exact (M, V) shape.
    return out2.reshape(B, T, V)


def reference_forward(x, w, b):
    logits = jnp.einsum("bth,hv->btv", x, w) + b
    return jax.nn.log_softmax(logits, axis=2)


if __name__ == "__main__":
    key = jax.random.PRNGKey(0)

    def run_case(B, T, H, V, tm):
        kx, kw, kb = jax.random.split(jax.random.fold_in(key, B * 1000 + T), 3)
        x = jax.random.normal(kx, (B, T, H), dtype=jnp.float32)
        # Deterministic synthetic Linear(eprojs=H, odim=V) parameters.
        w = jax.random.normal(kw, (H, V), dtype=jnp.float32) * 0.05
        b = jax.random.normal(kb, (V,), dtype=jnp.float32) * 0.05

        out = jax.block_until_ready(ctc_forward(x, w, b, tm=tm))
        ref = reference_forward(x, w, b)

        assert out.shape == (B, T, V)
        assert bool(jnp.all(jnp.isfinite(out)))
        # bf16 matmul with f32 accumulation vs full-f32 reference.
        assert jnp.allclose(out, ref, atol=2e-2, rtol=2e-2), "mismatch vs reference"
        # Rows must be valid log-probability distributions over the vocab.
        assert jnp.allclose(jnp.exp(out).sum(-1), 1.0, atol=1e-3)

    # V=100 (not lane-aligned) and a single grid step.
    run_case(B=2, T=8, H=32, V=100, tm=256)
    # Small tile forces a multi-step grid with a masked partial last row block
    # (26 rows, tile 8) and a non-128-multiple vocab (72).
    run_case(B=2, T=13, H=32, V=72, tm=8)

    print("KERNEL_OK")
</pallas_src>

<mosaic_0001>
module attributes {stable_mosaic.version = 11 : i64} {
  func.func @ctc_logsoftmax_kernel(%arg0: i32, %arg1: memref<16x32xf32, #tpu.memory_space<vmem>>, %arg2: memref<32x100xbf16, #tpu.memory_space<vmem>>, %arg3: memref<1x100xf32, #tpu.memory_space<vmem>>, %arg4: memref<16x100xf32, #tpu.memory_space<vmem>>) attributes {dimension_semantics = [#tpu.dimension_semantics<parallel>], iteration_bounds = array<i64: 1>, scalar_prefetch = 0 : i64, scratch_operands = 0 : i64, tpu.core_type = #tpu.core_type<tc>, window_params = [{transform_indices = @transform_0, window_bounds = array<i64: 16, 32>}, {pipeline_mode = #tpu.pipeline_mode<synchronous>, transform_indices = @transform_1, window_bounds = array<i64: 32, 100>}, {pipeline_mode = #tpu.pipeline_mode<synchronous>, transform_indices = @transform_2, window_bounds = array<i64: 1, 100>}, {transform_indices = @transform_3, window_bounds = array<i64: 16, 100>}]} {
    %c0 = arith.constant 0 : index
    %c0_0 = arith.constant 0 : index
    %0 = vector.load %arg1[%c0, %c0_0] : memref<16x32xf32, #tpu.memory_space<vmem>>, vector<16x32xf32>
    %1 = arith.truncf %0 : vector<16x32xf32> to vector<16x32xbf16>
    %c0_1 = arith.constant 0 : index
    %c0_2 = arith.constant 0 : index
    %2 = vector.load %arg2[%c0_1, %c0_2] : memref<32x100xbf16, #tpu.memory_space<vmem>>, vector<32x100xbf16>
    %cst = arith.constant dense<0.000000e+00> : vector<16x100xf32>
    %3 = tpu.matmul %1, %2, %cst {dimension_numbers = #tpu.dot_dimension_numbers<[1], [0], [0], [1], [0, 0, 1, 1], [], []>} : vector<16x32xbf16>, vector<32x100xbf16>, vector<16x100xf32> -> vector<16x100xf32>
    %c0_3 = arith.constant 0 : index
    %c0_4 = arith.constant 0 : index
    %4 = vector.load %arg3[%c0_3, %c0_4] : memref<1x100xf32, #tpu.memory_space<vmem>>, vector<1x100xf32>
    %5 = vector.broadcast %4 : vector<1x100xf32> to vector<16x100xf32>
    %6 = arith.addf %3, %5 : vector<16x100xf32>
    %cst_5 = arith.constant dense<0xFF800000> : vector<16xf32>
    %7 = vector.multi_reduction <maximumf>, %6, %cst_5 [1] : vector<16x100xf32> to vector<16xf32>
    %8 = vector.shape_cast %7 : vector<16xf32> to vector<16x1xf32>
    %9 = vector.broadcast %8 : vector<16x1xf32> to vector<16x100xf32>
    %10 = arith.subf %6, %9 : vector<16x100xf32>
    %11 = math.exp %10 : vector<16x100xf32>
    %cst_6 = arith.constant dense<0.000000e+00> : vector<16xf32>
    %12 = vector.multi_reduction <add>, %11, %cst_6 [1] : vector<16x100xf32> to vector<16xf32>
    %13 = vector.shape_cast %12 : vector<16xf32> to vector<16x1xf32>
    %14 = math.log %13 : vector<16x1xf32>
    %15 = vector.broadcast %14 : vector<16x1xf32> to vector<16x100xf32>
    %16 = arith.subf %10, %15 : vector<16x100xf32>
    %c0_7 = arith.constant 0 : index
    %c0_8 = arith.constant 0 : index
    %17 = vector.load %arg4[%c0_7, %c0_8] : memref<16x100xf32, #tpu.memory_space<vmem>>, vector<16x100xf32>
    tpu.vector_store %arg4[%c0_7, %c0_8], %16 {strides = array<i32>} : memref<16x100xf32, #tpu.memory_space<vmem>>, vector<16x100xf32>,
    return
  }
  func.func @transform_0(%arg0: i32) -> (i32, i32) {
    %c0_i32 = arith.constant 0 : i32
    %c0_i32_0 = arith.constant 0 : i32
    return %arg0, %c0_i32 : i32, i32
  }
  func.func @transform_1(%arg0: i32) -> (i32, i32) {
    %c0_i32 = arith.constant 0 : i32
    %c0_i32_0 = arith.constant 0 : i32
    %c0_i32_1 = arith.constant 0 : i32
    return %c0_i32, %c0_i32_0 : i32, i32
  }
  func.func @transform_2(%arg0: i32) -> (i32, i32) {
    %c0_i32 = arith.constant 0 : i32
    %c0_i32_0 = arith.constant 0 : i32
    %c0_i32_1 = arith.constant 0 : i32
    return %c0_i32, %c0_i32_0 : i32, i32
  }
  func.func @transform_3(%arg0: i32) -> (i32, i32) {
    %c0_i32 = arith.constant 0 : i32
    %c0_i32_0 = arith.constant 0 : i32
    return %arg0, %c0_i32 : i32, i32
  }
}

</mosaic_0001>

<bundles_post_ra>
// kernel: ctc_forward.1
= control target key start
LH: loop header
LB: loop body
LE: loop exit
PB: predicated region body
PF: predicated region fallthrough
CT: control target
= control target key end

     0   :  { %v184_v1 = vmov 0.0   ;;  %vm185_vm0 = vmmov 0   ;;  %s242_s0 = inlined_call_operand.vmem [shape: f32[16,32], index: 0, kind: input, shape index: {}]   ;;  %s243_s1 = inlined_call_operand.vmem [shape: bf16[32,100], index: 1, kind: input, shape index: {}]   ;;  %s244_s2 = inlined_call_operand.vmem [shape: f32[1,100], index: 2, kind: input, shape index: {}]   ;;  %s245_s3 = inlined_call_operand.hbm [shape: f32[16,100], index: 3, kind: output, shape index: {}]  }
   0x1   :  { %v150_v0 = vld [vmem:[%s243_s1] sm:$0xff]   ;;  %137 = vmatprep.subr.bf16.mxu0 %v184_v1  ;;  %v151_v2 = vld [vmem:[%s243_s1 + $0x8] sm:$0xff]   ;;  %141 = vmatprep.mubr.msk.bf16.mxu0 %vm185_vm0, %v184_v1 }
   0x2   :  { %138 = vmatpush3.bf16.msra.mxu0 %v150_v0  ;;  %v16_v3 = vld [vmem:[%s242_s0] sm:$0xff]  ;;  %v17_v4 = vld [vmem:[%s242_s0 + $0x8] sm:$0xff] }
   0x3   :  { %139 = vmatprep.subr.bf16.mxu0 %v184_v1 }
   0x4   :  { %8 = vsyncpa [#allocation3], 0  ;;  %v18_v5 = vpack.c.bf16 %v17_v4, %v16_v3  ;;  %vm42_vm1 = vcmask 261120   ;;  %v130_v6 = vld [vmem:[%s244_s2] ss:$0 sm:$0xff]  ;;  %vm87_vm2 = vcmask 818176  }
   0x5   :  { %s186_s0 = smov [#allocation2]  }
   0x6   :  { %140 = vmatpush3.bf16.msra.mxu0 %v151_v2  ;;  %s119_s1 = sshll.u32 %s186_s0, 4  ;;  %s120_s1 = int_to_ptr.vmem [resolvable:$true] %s119_s1 }
   0x7   :  { %s160_s2 = scalar_lea.vmem %s120_s1, 256  ;;  %p165_p1 = scmp.lt.s32.totalorder %s120_s1, %s120_s1 }
   0x8   :  { %p161_p0 = scmp.ne.s32.totalorder %s120_s1, %s160_s2  ;;  %p166_p2 = scmp.lt.s32.totalorder %s160_s2, %s160_s2 }
   0x9   :  { %142 = vmatmul.mubr.msk.bf16.vlgmr.msra.gmra.mrb[0].mxu0 %vm42_vm1, %v18_v5 }
   0xa   :  { %p167_p3 = por %p166_p2, %p165_p1 }
   0xc   :  { %p168_p4 = pnand %p167_p3, %p161_p0 }
  0xdc   :  { %v80_v7 = vpop.f32.mrb[0].mxu0 }
  0xdd   :  { %v81_v8 = vadd.f32 %v130_v6, %v80_v7  ;;  %v143_v9 = vpop.f32.mrb[1].mxu0 }
  0xde   :  { %v83_v10 = vpop.f32.mrb[2].mxu0 }
  0xdf   :  { %v84_v11 = vadd.f32 %v130_v6, %v83_v10  ;;  %v144_v12 = vpop.f32.mrb[3].mxu0  ;;  %v88_v13 = vsel %vm87_vm2, %v81_v8, -inf }
  0xe0   :  { %89 = vmax.xlane.f32.xlu0 %v88_v13 }
  0xe1   :  { %v91_v14 = vsel %vm87_vm2, %v84_v11, -inf }
  0xe4   :  { %92 = vmax.xlane.f32.xlu0 %v91_v14 }
 0x16d   :  { %v90_v15 = vpop.xlane.xlu0 %89 }
 0x16e   :  { %v94_v16 = vsub.f32 %v81_v8, %v90_v15 }
 0x170   :  { %v96_v17 = vmul.f32 1.442695, %v94_v16 }
 0x171   :  { %v93_v18 = vpop.xlane.xlu0 %92 }
 0x172   :  { %152 = vpow2.f32 %v96_v17  ;;  %v95_v19 = vsub.f32 %v84_v11, %v93_v18 }
 0x174   :  { %v98_v20 = vmul.f32 1.442695, %v95_v19 }
 0x176   :  { %154 = vpow2.f32 %v98_v20 }
 0x17c   :  { %v153_v21 = vpop.eup %152 }
 0x17d   :  { %v100_v22 = vsel %vm87_vm2, %v153_v21, 0.0 }
 0x17e   :  { %101 = vadd.xlane.f32.xlu1 %v100_v22 }
 0x180   :  { %v155_v23 = vpop.eup %154 }
 0x181   :  { %v103_v24 = vsel %vm87_vm2, %v155_v23, 0.0 }
 0x182   :  { %104 = vadd.xlane.f32.xlu1 %v103_v24 }
 0x20b   :  { %v102_v25 = vpop.xlane.xlu1 %101 }
 0x20c   :  { %156 = vlog2.f32 %v102_v25 }
 0x20f   :  { %v105_v26 = vpop.xlane.xlu1 %104 }
 0x210   :  { %158 = vlog2.f32 %v105_v26 }
 0x216   :  { %v157_v27 = vpop.eup %156 }
 0x217   :  { %v107_v28 = vmul.f32 0.6931472, %v157_v27 }
 0x219   :  { %v110_v29 = vsub.f32 %v94_v16, %v107_v28 }
 0x21a   :  { %v159_v30 = vpop.eup %158 }
 0x21b   :  { %112 = vst.msk [vmem:[#allocation2] sm:$0xff] %vm87_vm2, %v110_v29  ;;  %v109_v31 = vmul.f32 0.6931472, %v159_v30 }
 0x21d   :  { %v111_v32 = vsub.f32 %v95_v19, %v109_v31 }
 0x21f   :  { %113 = vst.msk [vmem:[#allocation2 + $0x8] sm:$0xff] %vm87_vm2, %v111_v32 }
 0x220   :  { %171 = shalt.err (!%p168_p4)
}
 0x221   :  { %s172_s24 = scalar_lea.hbm %s245_s3, 256 }
 0x222   :  { %p173_p5 = scmp.ne.s32.totalorder %s245_s3, %s172_s24  ;;  %p176_p6 = scmp.lt.u32.totalorder %s172_s24, %s245_s3 }
 0x224   :  { %p178_p7 = pnand %p176_p6, %p173_p5 }
 0x226   :  { %181 = shalt.err (!%p178_p7)
}
 0x227   :  { %s187_s29 = smov 128   ;;  %s188_s30 = smov 8  }
 0x228   :  { %125 = dma.vmem_to_hbm [thread:$0]  %s120_s1, 256, %s245_s3, [#allocation3], %s187_s29, %s187_s29, %s188_s30  }
 0x229   :  { %182 = dma.done.wait [#allocation3], 256  }
 0x22a   :  { %183 = vsyncadd [#allocation3], 4294967040 }
 0x22b   :  { %129 = vsyncpa [#allocation3], 1 }

</bundles_post_ra>
